<compile_context>
chip_gen: v6e
topology: v6e:2x2x1
jax: 0.10.0
libtpu: 0.0.40
codegen_flags: <defaults>
</compile_context>

<pallas_src>
import numpy as np
import jax
import jax.numpy as jnp
from jax.experimental import pallas as pl
from jax.experimental.pallas import tpu as pltpu


def _make_kernel(C, F, w_consts, use_double_angle):
    """Fused kernel: x block (1, C, HWt) -> output block (1, C + 2*C*F, HWt)."""
    sin_base = C
    cos_base = C + C * F

    def kernel(x_ref, o_ref):
        # Passthrough of the original channels (bit-exact copy, multi-row store).
        o_ref[0, 0:C, :] = x_ref[0]

        x = x_ref[0].astype(jnp.float32)          # (C, HWt) — compute in f32

        def emit(f, s_val, c_val):
            s_o = s_val.astype(o_ref.dtype)
            c_o = c_val.astype(o_ref.dtype)
            for ci in range(C):                   # static tiny loops (C, F small)
                r = ci * F + f                    # torch order: channel-major, freq-minor
                o_ref[0, sin_base + r:sin_base + r + 1, :] = s_o[ci:ci + 1, :]
                o_ref[0, cos_base + r:cos_base + r + 1, :] = c_o[ci:ci + 1, :]

        if use_double_angle:
            # w_{f+1} = 2 * w_f  (step == 1): derive higher octaves on the VPU,
            # evaluating sin/cos only once -> roughly halves transcendental work.
            h0 = x * w_consts[0]
            s = jnp.sin(h0)
            c = jnp.cos(h0)
            emit(0, s, c)
            for f in range(1, F):
                s_new = 2.0 * s * c
                c_new = 1.0 - 2.0 * s * s
                s, c = s_new, c_new
                emit(f, s, c)
        else:
            for f in range(F):
                h = x * w_consts[f]
                emit(f, jnp.sin(h), jnp.cos(h))

    return kernel


def _pick_hw_tile(HW, C, C_out, itemsize, budget_bytes=10 * 1024 * 1024):
    """Largest 128-aligned spatial tile whose double-buffered in+out blocks fit
    a conservative VMEM budget (safe for v5e 16 MiB / v6e 32 MiB / v7x 32 MiB
    default scoped VMEM)."""
    pad8 = lambda v: -(-v // 8) * 8
    per_lane = 2 * (pad8(C) + pad8(C_out)) * itemsize   # 2x = double buffering
    max_lanes = max(128, budget_bytes // per_lane)
    if HW <= max_lanes:
        return HW                                        # full extent (legal even if <128)
    return max(128, (min(max_lanes, HW) // 128) * 128)


def base2_fourier_features(x, start=6, stop=8, step=1, *,
                           use_double_angle=False, hw_tile=None):
    """Pallas implementation of Base2FourierFeatures.forward.

    x: (B, C, H, W).  Returns (B, C + 2*C*F, H, W), F = len(range(start, stop, step)).
    Output channels: [x, sin(h), cos(h)] with h channel order (c major, f minor).
    """
    B, C, H, W = x.shape
    freqs = np.arange(start, stop, step, dtype=np.float64)
    F = len(freqs)
    if F == 0:
        return x
    w_consts = tuple(float(v) for v in (2.0 ** freqs) * 2.0 * np.pi)
    use_da = bool(use_double_angle) and step == 1 and F > 1

    C_out = C + 2 * C * F
    HW = H * W
    itemsize = jnp.dtype(x.dtype).itemsize

    if hw_tile is None:
        hw_tile = _pick_hw_tile(HW, C, C_out, itemsize)
    n_hw = pl.cdiv(HW, hw_tile)

    xf = x.reshape(B, C, HW)                     # free (bitcast) reshape

    kernel = _make_kernel(C, F, w_consts, use_da)

    cost = pl.CostEstimate(
        flops=int(4 * B * C * F * HW),                       # muls + recurrences
        transcendentals=int((2 if use_da else 2 * F) * B * C * HW),
        bytes_accessed=int((B * C * HW + B * C_out * HW) * itemsize),
    )

    out = pl.pallas_call(
        kernel,
        out_shape=jax.ShapeDtypeStruct((B, C_out, HW), x.dtype),
        grid=(B, n_hw),
        in_specs=[pl.BlockSpec((1, C, hw_tile), lambda b, j: (b, 0, j))],
        out_specs=pl.BlockSpec((1, C_out, hw_tile), lambda b, j: (b, 0, j)),
        compiler_params=pltpu.CompilerParams(
            dimension_semantics=("parallel", "parallel")),
        cost_estimate=cost,
    )(xf)

    return out.reshape(B, C_out, H, W)           # free (bitcast) reshape


def _reference(x, start=6, stop=8, step=1):
    """Pure-JAX transcription of the PyTorch forward, for verification."""
    B, C, H, W = x.shape
    freqs = jnp.arange(start, stop, step, dtype=x.dtype)
    w = (2.0 ** freqs) * 2.0 * jnp.pi
    w = jnp.tile(w, C).reshape(1, -1, 1, 1)          # torch .repeat(C)
    xe = jnp.repeat(x, len(freqs), axis=1)           # torch repeat_interleave
    h = xe * w
    return jnp.concatenate([x, jnp.sin(h), jnp.cos(h)], axis=1)


if __name__ == "__main__":
    key = jax.random.PRNGKey(0)
    # Small NCHW input: B=2, C=4, H=W=16  ->  output (2, 20, 16, 16)
    x = jax.random.normal(key, (2, 4, 16, 16), dtype=jnp.float32)

    ref = _reference(x)

    # Default path: direct sin/cos, tight tolerance vs the reference.
    out = jax.block_until_ready(base2_fourier_features(x))
    assert out.shape == (2, 20, 16, 16), out.shape
    np.testing.assert_allclose(np.asarray(out), np.asarray(ref),
                               rtol=1e-5, atol=1e-5)

    # Optional double-angle path (halves transcendental work); slightly looser
    # tolerance since the recurrence drifts from direct evaluation at large |h|.
    out_da = jax.block_until_ready(base2_fourier_features(x, use_double_angle=True))
    np.testing.assert_allclose(np.asarray(out_da), np.asarray(ref),
                               rtol=1e-3, atol=5e-3)

    print("KERNEL_OK")
</pallas_src>

<mosaic_0001>
module attributes {stable_mosaic.version = 11 : i64} {
  func.func @kernel(%arg0: i32, %arg1: i32, %arg2: memref<1x4x256xf32, #tpu.memory_space<vmem>>, %arg3: memref<1x20x256xf32, #tpu.memory_space<vmem>>) attributes {dimension_semantics = [#tpu.dimension_semantics<parallel>, #tpu.dimension_semantics<parallel>], iteration_bounds = array<i64: 2, 1>, scalar_prefetch = 0 : i64, scratch_operands = 0 : i64, tpu.core_type = #tpu.core_type<tc>, window_params = [{transform_indices = @transform_0, window_bounds = array<i64: 1, 4, 256>}, {transform_indices = @transform_1, window_bounds = array<i64: 1, 20, 256>}]} {
    %c0 = arith.constant 0 : index
    %c0_0 = arith.constant 0 : index
    %c0_1 = arith.constant 0 : index
    %0 = vector.load %arg2[%c0, %c0_0, %c0_1] : memref<1x4x256xf32, #tpu.memory_space<vmem>>, vector<1x4x256xf32>
    %1 = vector.shape_cast %0 : vector<1x4x256xf32> to vector<4x256xf32>
    %c0_2 = arith.constant 0 : index
    %c0_3 = arith.constant 0 : index
    %c0_4 = arith.constant 0 : index
    %2 = vector.load %arg3[%c0_2, %c0_3, %c0_4] : memref<1x20x256xf32, #tpu.memory_space<vmem>>, vector<1x4x256xf32>
    %3 = vector.shape_cast %2 : vector<1x4x256xf32> to vector<4x256xf32>
    %4 = vector.shape_cast %1 : vector<4x256xf32> to vector<1x4x256xf32>
    tpu.vector_store %arg3[%c0_2, %c0_3, %c0_4], %4 {strides = array<i32>} : memref<1x20x256xf32, #tpu.memory_space<vmem>>, vector<1x4x256xf32>,
    %c0_5 = arith.constant 0 : index
    %c0_6 = arith.constant 0 : index
    %c0_7 = arith.constant 0 : index
    %5 = vector.load %arg2[%c0_5, %c0_6, %c0_7] : memref<1x4x256xf32, #tpu.memory_space<vmem>>, vector<1x4x256xf32>
    %6 = vector.shape_cast %5 : vector<1x4x256xf32> to vector<4x256xf32>
    %cst = arith.constant 402.123871 : f32
    %7 = vector.broadcast %cst : f32 to vector<4x256xf32>
    %8 = arith.mulf %6, %7 : vector<4x256xf32>
    %9 = math.sin %8 : vector<4x256xf32>
    %10 = math.cos %8 : vector<4x256xf32>
    %11 = vector.extract_strided_slice %9 {offsets = [0, 0], sizes = [1, 256], strides = [1, 1]} : vector<4x256xf32> to vector<1x256xf32>
    %c0_8 = arith.constant 0 : index
    %c4 = arith.constant 4 : index
    %c0_9 = arith.constant 0 : index
    %12 = vector.load %arg3[%c0_8, %c4, %c0_9] : memref<1x20x256xf32, #tpu.memory_space<vmem>>, vector<1x1x256xf32>
    %13 = vector.shape_cast %12 : vector<1x1x256xf32> to vector<1x256xf32>
    %14 = vector.shape_cast %11 : vector<1x256xf32> to vector<1x1x256xf32>
    tpu.vector_store %arg3[%c0_8, %c4, %c0_9], %14 {strides = array<i32>} : memref<1x20x256xf32, #tpu.memory_space<vmem>>, vector<1x1x256xf32>,
    %15 = vector.extract_strided_slice %10 {offsets = [0, 0], sizes = [1, 256], strides = [1, 1]} : vector<4x256xf32> to vector<1x256xf32>
    %c0_10 = arith.constant 0 : index
    %c12 = arith.constant 12 : index
    %c0_11 = arith.constant 0 : index
    %16 = vector.load %arg3[%c0_10, %c12, %c0_11] : memref<1x20x256xf32, #tpu.memory_space<vmem>>, vector<1x1x256xf32>
    %17 = vector.shape_cast %16 : vector<1x1x256xf32> to vector<1x256xf32>
    %18 = vector.shape_cast %15 : vector<1x256xf32> to vector<1x1x256xf32>
    tpu.vector_store %arg3[%c0_10, %c12, %c0_11], %18 {strides = array<i32>} : memref<1x20x256xf32, #tpu.memory_space<vmem>>, vector<1x1x256xf32>,
    %19 = vector.extract_strided_slice %9 {offsets = [1, 0], sizes = [1, 256], strides = [1, 1]} : vector<4x256xf32> to vector<1x256xf32>
    %c0_12 = arith.constant 0 : index
    %c6 = arith.constant 6 : index
    %c0_13 = arith.constant 0 : index
    %20 = vector.load %arg3[%c0_12, %c6, %c0_13] : memref<1x20x256xf32, #tpu.memory_space<vmem>>, vector<1x1x256xf32>
    %21 = vector.shape_cast %20 : vector<1x1x256xf32> to vector<1x256xf32>
    %22 = vector.shape_cast %19 : vector<1x256xf32> to vector<1x1x256xf32>
    tpu.vector_store %arg3[%c0_12, %c6, %c0_13], %22 {strides = array<i32>} : memref<1x20x256xf32, #tpu.memory_space<vmem>>, vector<1x1x256xf32>,
    %23 = vector.extract_strided_slice %10 {offsets = [1, 0], sizes = [1, 256], strides = [1, 1]} : vector<4x256xf32> to vector<1x256xf32>
    %c0_14 = arith.constant 0 : index
    %c14 = arith.constant 14 : index
    %c0_15 = arith.constant 0 : index
    %24 = vector.load %arg3[%c0_14, %c14, %c0_15] : memref<1x20x256xf32, #tpu.memory_space<vmem>>, vector<1x1x256xf32>
    %25 = vector.shape_cast %24 : vector<1x1x256xf32> to vector<1x256xf32>
    %26 = vector.shape_cast %23 : vector<1x256xf32> to vector<1x1x256xf32>
    tpu.vector_store %arg3[%c0_14, %c14, %c0_15], %26 {strides = array<i32>} : memref<1x20x256xf32, #tpu.memory_space<vmem>>, vector<1x1x256xf32>,
    %27 = vector.extract_strided_slice %9 {offsets = [2, 0], sizes = [1, 256], strides = [1, 1]} : vector<4x256xf32> to vector<1x256xf32>
    %c0_16 = arith.constant 0 : index
    %c8 = arith.constant 8 : index
    %c0_17 = arith.constant 0 : index
    %28 = vector.load %arg3[%c0_16, %c8, %c0_17] : memref<1x20x256xf32, #tpu.memory_space<vmem>>, vector<1x1x256xf32>
    %29 = vector.shape_cast %28 : vector<1x1x256xf32> to vector<1x256xf32>
    %30 = vector.shape_cast %27 : vector<1x256xf32> to vector<1x1x256xf32>
    tpu.vector_store %arg3[%c0_16, %c8, %c0_17], %30 {strides = array<i32>} : memref<1x20x256xf32, #tpu.memory_space<vmem>>, vector<1x1x256xf32>,
    %31 = vector.extract_strided_slice %10 {offsets = [2, 0], sizes = [1, 256], strides = [1, 1]} : vector<4x256xf32> to vector<1x256xf32>
    %c0_18 = arith.constant 0 : index
    %c16 = arith.constant 16 : index
    %c0_19 = arith.constant 0 : index
    %32 = vector.load %arg3[%c0_18, %c16, %c0_19] : memref<1x20x256xf32, #tpu.memory_space<vmem>>, vector<1x1x256xf32>
    %33 = vector.shape_cast %32 : vector<1x1x256xf32> to vector<1x256xf32>
    %34 = vector.shape_cast %31 : vector<1x256xf32> to vector<1x1x256xf32>
    tpu.vector_store %arg3[%c0_18, %c16, %c0_19], %34 {strides = array<i32>} : memref<1x20x256xf32, #tpu.memory_space<vmem>>, vector<1x1x256xf32>,
    %35 = vector.extract_strided_slice %9 {offsets = [3, 0], sizes = [1, 256], strides = [1, 1]} : vector<4x256xf32> to vector<1x256xf32>
    %c0_20 = arith.constant 0 : index
    %c10 = arith.constant 10 : index
    %c0_21 = arith.constant 0 : index
    %36 = vector.load %arg3[%c0_20, %c10, %c0_21] : memref<1x20x256xf32, #tpu.memory_space<vmem>>, vector<1x1x256xf32>
    %37 = vector.shape_cast %36 : vector<1x1x256xf32> to vector<1x256xf32>
    %38 = vector.shape_cast %35 : vector<1x256xf32> to vector<1x1x256xf32>
    tpu.vector_store %arg3[%c0_20, %c10, %c0_21], %38 {strides = array<i32>} : memref<1x20x256xf32, #tpu.memory_space<vmem>>, vector<1x1x256xf32>,
    %39 = vector.extract_strided_slice %10 {offsets = [3, 0], sizes = [1, 256], strides = [1, 1]} : vector<4x256xf32> to vector<1x256xf32>
    %c0_22 = arith.constant 0 : index
    %c18 = arith.constant 18 : index
    %c0_23 = arith.constant 0 : index
    %40 = vector.load %arg3[%c0_22, %c18, %c0_23] : memref<1x20x256xf32, #tpu.memory_space<vmem>>, vector<1x1x256xf32>
    %41 = vector.shape_cast %40 : vector<1x1x256xf32> to vector<1x256xf32>
    %42 = vector.shape_cast %39 : vector<1x256xf32> to vector<1x1x256xf32>
    tpu.vector_store %arg3[%c0_22, %c18, %c0_23], %42 {strides = array<i32>} : memref<1x20x256xf32, #tpu.memory_space<vmem>>, vector<1x1x256xf32>,
    %cst_24 = arith.constant 804.247741 : f32
    %43 = vector.broadcast %cst_24 : f32 to vector<4x256xf32>
    %44 = arith.mulf %6, %43 : vector<4x256xf32>
    %45 = math.sin %44 : vector<4x256xf32>
    %46 = math.cos %44 : vector<4x256xf32>
    %47 = vector.extract_strided_slice %45 {offsets = [0, 0], sizes = [1, 256], strides = [1, 1]} : vector<4x256xf32> to vector<1x256xf32>
    %c0_25 = arith.constant 0 : index
    %c5 = arith.constant 5 : index
    %c0_26 = arith.constant 0 : index
    %48 = vector.load %arg3[%c0_25, %c5, %c0_26] : memref<1x20x256xf32, #tpu.memory_space<vmem>>, vector<1x1x256xf32>
    %49 = vector.shape_cast %48 : vector<1x1x256xf32> to vector<1x256xf32>
    %50 = vector.shape_cast %47 : vector<1x256xf32> to vector<1x1x256xf32>
    tpu.vector_store %arg3[%c0_25, %c5, %c0_26], %50 {strides = array<i32>} : memref<1x20x256xf32, #tpu.memory_space<vmem>>, vector<1x1x256xf32>,
    %51 = vector.extract_strided_slice %46 {offsets = [0, 0], sizes = [1, 256], strides = [1, 1]} : vector<4x256xf32> to vector<1x256xf32>
    %c0_27 = arith.constant 0 : index
    %c13 = arith.constant 13 : index
    %c0_28 = arith.constant 0 : index
    %52 = vector.load %arg3[%c0_27, %c13, %c0_28] : memref<1x20x256xf32, #tpu.memory_space<vmem>>, vector<1x1x256xf32>
    %53 = vector.shape_cast %52 : vector<1x1x256xf32> to vector<1x256xf32>
    %54 = vector.shape_cast %51 : vector<1x256xf32> to vector<1x1x256xf32>
    tpu.vector_store %arg3[%c0_27, %c13, %c0_28], %54 {strides = array<i32>} : memref<1x20x256xf32, #tpu.memory_space<vmem>>, vector<1x1x256xf32>,
    %55 = vector.extract_strided_slice %45 {offsets = [1, 0], sizes = [1, 256], strides = [1, 1]} : vector<4x256xf32> to vector<1x256xf32>
    %c0_29 = arith.constant 0 : index
    %c7 = arith.constant 7 : index
    %c0_30 = arith.constant 0 : index
    %56 = vector.load %arg3[%c0_29, %c7, %c0_30] : memref<1x20x256xf32, #tpu.memory_space<vmem>>, vector<1x1x256xf32>
    %57 = vector.shape_cast %56 : vector<1x1x256xf32> to vector<1x256xf32>
    %58 = vector.shape_cast %55 : vector<1x256xf32> to vector<1x1x256xf32>
    tpu.vector_store %arg3[%c0_29, %c7, %c0_30], %58 {strides = array<i32>} : memref<1x20x256xf32, #tpu.memory_space<vmem>>, vector<1x1x256xf32>,
    %59 = vector.extract_strided_slice %46 {offsets = [1, 0], sizes = [1, 256], strides = [1, 1]} : vector<4x256xf32> to vector<1x256xf32>
    %c0_31 = arith.constant 0 : index
    %c15 = arith.constant 15 : index
    %c0_32 = arith.constant 0 : index
    %60 = vector.load %arg3[%c0_31, %c15, %c0_32] : memref<1x20x256xf32, #tpu.memory_space<vmem>>, vector<1x1x256xf32>
    %61 = vector.shape_cast %60 : vector<1x1x256xf32> to vector<1x256xf32>
    %62 = vector.shape_cast %59 : vector<1x256xf32> to vector<1x1x256xf32>
    tpu.vector_store %arg3[%c0_31, %c15, %c0_32], %62 {strides = array<i32>} : memref<1x20x256xf32, #tpu.memory_space<vmem>>, vector<1x1x256xf32>,
    %63 = vector.extract_strided_slice %45 {offsets = [2, 0], sizes = [1, 256], strides = [1, 1]} : vector<4x256xf32> to vector<1x256xf32>
    %c0_33 = arith.constant 0 : index
    %c9 = arith.constant 9 : index
    %c0_34 = arith.constant 0 : index
    %64 = vector.load %arg3[%c0_33, %c9, %c0_34] : memref<1x20x256xf32, #tpu.memory_space<vmem>>, vector<1x1x256xf32>
    %65 = vector.shape_cast %64 : vector<1x1x256xf32> to vector<1x256xf32>
    %66 = vector.shape_cast %63 : vector<1x256xf32> to vector<1x1x256xf32>
    tpu.vector_store %arg3[%c0_33, %c9, %c0_34], %66 {strides = array<i32>} : memref<1x20x256xf32, #tpu.memory_space<vmem>>, vector<1x1x256xf32>,
    %67 = vector.extract_strided_slice %46 {offsets = [2, 0], sizes = [1, 256], strides = [1, 1]} : vector<4x256xf32> to vector<1x256xf32>
    %c0_35 = arith.constant 0 : index
    %c17 = arith.constant 17 : index
    %c0_36 = arith.constant 0 : index
    %68 = vector.load %arg3[%c0_35, %c17, %c0_36] : memref<1x20x256xf32, #tpu.memory_space<vmem>>, vector<1x1x256xf32>
    %69 = vector.shape_cast %68 : vector<1x1x256xf32> to vector<1x256xf32>
    %70 = vector.shape_cast %67 : vector<1x256xf32> to vector<1x1x256xf32>
    tpu.vector_store %arg3[%c0_35, %c17, %c0_36], %70 {strides = array<i32>} : memref<1x20x256xf32, #tpu.memory_space<vmem>>, vector<1x1x256xf32>,
    %71 = vector.extract_strided_slice %45 {offsets = [3, 0], sizes = [1, 256], strides = [1, 1]} : vector<4x256xf32> to vector<1x256xf32>
    %c0_37 = arith.constant 0 : index
    %c11 = arith.constant 11 : index
    %c0_38 = arith.constant 0 : index
    %72 = vector.load %arg3[%c0_37, %c11, %c0_38] : memref<1x20x256xf32, #tpu.memory_space<vmem>>, vector<1x1x256xf32>
    %73 = vector.shape_cast %72 : vector<1x1x256xf32> to vector<1x256xf32>
    %74 = vector.shape_cast %71 : vector<1x256xf32> to vector<1x1x256xf32>
    tpu.vector_store %arg3[%c0_37, %c11, %c0_38], %74 {strides = array<i32>} : memref<1x20x256xf32, #tpu.memory_space<vmem>>, vector<1x1x256xf32>,
    %75 = vector.extract_strided_slice %46 {offsets = [3, 0], sizes = [1, 256], strides = [1, 1]} : vector<4x256xf32> to vector<1x256xf32>
    %c0_39 = arith.constant 0 : index
    %c19 = arith.constant 19 : index
    %c0_40 = arith.constant 0 : index
    %76 = vector.load %arg3[%c0_39, %c19, %c0_40] : memref<1x20x256xf32, #tpu.memory_space<vmem>>, vector<1x1x256xf32>
    %77 = vector.shape_cast %76 : vector<1x1x256xf32> to vector<1x256xf32>
    %78 = vector.shape_cast %75 : vector<1x256xf32> to vector<1x1x256xf32>
    tpu.vector_store %arg3[%c0_39, %c19, %c0_40], %78 {strides = array<i32>} : memref<1x20x256xf32, #tpu.memory_space<vmem>>, vector<1x1x256xf32>,
    return
  }
  func.func @transform_0(%arg0: i32, %arg1: i32) -> (i32, i32, i32) {
    %c0_i32 = arith.constant 0 : i32
    %c0_i32_0 = arith.constant 0 : i32
    return %arg0, %c0_i32, %arg1 : i32, i32, i32
  }
  func.func @transform_1(%arg0: i32, %arg1: i32) -> (i32, i32, i32) {
    %c0_i32 = arith.constant 0 : i32
    %c0_i32_0 = arith.constant 0 : i32
    return %arg0, %c0_i32, %arg1 : i32, i32, i32
  }
}

</mosaic_0001>

<bundles_post_ra>
// kernel: tpu_custom_call.1
= control target key start
LH: loop header
LB: loop body
LE: loop exit
PB: predicated region body
PF: predicated region fallthrough
CT: control target
= control target key end

     0   :  { %6 = vsyncpa [#allocation3], 0  ;;  %s1303_s0 = inlined_call_operand.hbm [shape: f32[2,4,256], index: 0, kind: input, shape index: {}]   ;;  %s1304_s1 = inlined_call_operand.vmem [shape: f32[2,20,256], index: 1, kind: output, shape index: {}]  }
   0x1   :  { %8 = vsyncpa [#allocation3 + $0x1], 0  ;;  %s1072_s6 = smov 0   ;;  %s1074_s7 = smov 0  }
   0x2   :  { %s1076_s8 = smov 0   ;;  %s1078_s9 = smov 0  }
   0x3   :  { %s1080_s10 = smov 0   ;;  %s1082_s11 = smov 0  }
   0x4 LB: > { %s849_s12 = sadd.s32 4294967295, %s1052_s11   ;;  %s26_s13 = sadd.s32 1, %s1048_s10  ;;  %s1052_s11 = sphi %s1082_s11, %s14_s11   ;;  %s1048_s10 = sphi %s1080_s10, %s1314_s10   ;;  %s1044_s9 = sphi %s1078_s9, %s1313_s9   ;;  %s1040_s8 = sphi %s1076_s8, %s1312_s8   ;;  %s1036_s7 = sphi %s1074_s7, %s1311_s7   ;;  %s1032_s6 = sphi %s1072_s6, %s1310_s6  }
   0x5   : > { %p28_p0 = scmp.ge.s32.totalorder %s26_s13, 2  ;;  %s35_s14 = sadd.s32 1, %s1040_s8 }
   0x6   : > { %p42_p1 = scmp.ne.s32.totalorder %s1040_s8, %s1036_s7  ;;  %p43_p2 = scmp.eq.s32.totalorder %s1052_s11, 0 }
   0x7   : > { %s1316_s13 = smov (%p28_p0, %s26_s13), 0  ;;  %p48_p4 = scmp.ne.s32.totalorder %s1036_s7, %s1032_s6 }
   0x8   : > { %p1108_p3 = por %p43_p2, %p42_p1  ;;  %s30_s16 = ssub.s32 %s1048_s10, %s1316_s13 }
   0x9   : > { %p49_p5 = scmp.eq.s32.totalorder %s849_s12, 0  ;;  %p33_p6 = scmp.eq.s32.totalorder %s30_s16, 0 }
   0xa   : > { %p909_p8 = scmp.lt.s32.totalorder %s1052_s11, 2  ;;  %s100_s19 = sand.u32 1, %s1040_s8  }
   0xb   : > { %p1115_p7 = por %p49_p5, %p48_p4  ;;  %s893_s20 = sshll.u32 %s1048_s10, 7 }
   0xc   : > { %s1121_s18 = scalar_select %p33_p6, %s1040_s8, %s35_s14  }
   0xd   : > { %s853_s21 = sshll.u32 %s100_s19, 3  ;;  %s112_s24 = scalar_lea.hbm %s1303_s0, %s893_s20 }
   0xe   : > { %s104_s25 = scalar_lea.vmem [#allocation2], %s853_s21  ;;  %p1130_p9 = pnand %p909_p8, %p1108_p3 }
   0xf   : > { %s114_s26 = sshll.u32 %s104_s25, 4  ;;  %p856_p10 = scmp.ge.s32.totalorder %s1052_s11, 1  ;;  %s115_s26 = int_to_ptr.vmem [resolvable:$true] %s114_s26 }
  0x10   : > { %p119_p11 = scmp.lt.s32.totalorder %s1052_s11, 3  ;;  %s101_s28 = scalar_lea.sflag [#allocation3], %s100_s19 }
  0x11   : > { %p976_p12 = pneg %p1130_p9  ;;  %s987_s29 = scalar_lea.vmem %s115_s26, 128 }
  0x12   : > { %p988_p13 = scmp.ne.s32.totalorder %s115_s26, %s987_s29  ;;  %s1054_s30 = smov [#allocation2]  }
  0x13   : > { %s992_s2 = sshll.u32 %s1054_s30, 4  ;;  %s993_s2 = int_to_ptr.vmem [resolvable:$false] %s992_s2 }
  0x14   : > { %p990_p0 = pnand %p988_p13, %p976_p12  ;;  %s994_s3 = scalar_lea.vmem %s993_s2, 256 }
  0x15   : > { %p995_p2 = scmp.lt.s32.totalorder %s115_s26, %s993_s2  ;;  %p996_p3 = scmp.lt.s32.totalorder %s994_s3, %s987_s29 }
  0x16   : > { %p991_p1 = pneg %p990_p0 }
  0x17   : > { %p997_p4 = por %p996_p3, %p995_p2 }
  0x19   : > { %p998_p5 = pnand %p997_p4, %p991_p1 }
  0x1b   : > { %1001 = shalt.err (!%p998_p5)
}
  0x1c   : > { %908 = dma.hbm_to_vmem [thread:$0]  (!%p1130_p9), %s112_s24, 128, %s115_s26, %s101_s28  }
  0x1d   : > { %p120_p6 = pnand %p856_p10, %p119_p11 }
  0x1e   : > { %s125_s4 = sand.u32 (!%p120_p6), 1, %s1036_s7  }
  0x1f   : > { %123 = sbr.rel (%p120_p6) target bundleno = 144 (0x90), region = 24  ;;  %s857_s5 = sshll.u32 (!%p120_p6), %s125_s4, 3 }
  0x20   : > { %s126_s6 = scalar_lea.sflag (!%p120_p6), [#allocation3], %s125_s4  ;;  %s129_s12 = scalar_lea.vmem (!%p120_p6), [#allocation2], %s857_s5 }
  0x24   : > { %1027 = dma.done.wait (%p1115_p7), %s126_s6, 128  }
  0x25   : > { %1029 = vsyncadd (%p1115_p7), %s126_s6, 4294967168  ;;  %p154_p8 = scmp.lt.s32.totalorder %s1044_s9, 1  ;;  %v163_v0 = vld [vmem:[%s129_s12] sm:$0xff]  ;;  %v1055_v26 = vmov 683565275  }
  0x26   : > { %v165_v1 = vcombine.high %v163_v0, %v163_v0  ;;  %v1157_v2 = vmul.f32 402.12387, %v163_v0  ;;  %v1159_v3 = vmul.f32 804.24774, %v163_v0  ;;  %v1056_v28 = vmov 2475754826  }
  0x27   : > { %s1318_s9 = smov (!%p154_p8, %s1044_s9), 1  ;;  %v1057_v30 = vmov 2131351028   ;;  %v1058_v32 = vmov 2102212464  }
  0x28   : > { %s894_s14 = smul.u32 48, %s1318_s9  ;;  %v171_v4 = vand.u32 2147483647, %v1157_v2  ;;  %v174_v5 = vand.u32 2139095040, %v1157_v2  ;;  %v465_v6 = vand.u32 2147483647, %v1159_v3 }
  0x29   : > { %v468_v7 = vand.u32 2139095040, %v1159_v3  ;;  %v1059_v34 = vmov 920167782   ;;  %v1060_v42 = vmov 1326507024   ;;  %vm173_vm14 = vcmp.lt.s32.totalorder %v1157_v2, 0 }
  0x2a   : > { %s1154_s19 = scalar_lea.vmem %s1304_s1, %s894_s14  ;;  %v175_v8 = vshrl.u32 %v174_v5, 23  ;;  %v178_v9 = vand.u32 8388607, %v171_v4  ;;  %v472_v11 = vand.u32 8388607, %v465_v6 }
  0x2b   : > { %167 = vst [vmem:[%s1154_s19] sm:$0xf] %v163_v0  ;;  %168 = vst [vmem:[%s1154_s19 + $0x8] sm:$0xf] %v165_v1  ;;  %v469_v10 = vshrl.u32 %v468_v7, 23  ;;  %vm172_vm15 = vcmp.le.f32.partialorder %v171_v4, 0.7853982 }
  0x2c   : > { %v859_v12 = vadd.s32 4294967169, %v175_v8  ;;  %v179_v15 = vor.u32 8388608, %v178_v9  ;;  %v473_v16 = vor.u32 8388608, %v472_v11 }
  0x2d   : > { %v875_v13 = vadd.s32 4294967169, %v469_v10 }
  0x2e   : > { %v181_v14 = vadd.s32 1, %v859_v12  ;;  %v1170_v22 = vshll.u32 %v179_v15, 8  ;;  %v1172_v24 = vshll.u32 %v473_v16, 8 }
  0x2f   : > { %v475_v17 = vadd.s32 1, %v875_v13 }
  0x30   : > { %vm182_vm0 = vcmp.gt.s32.totalorder %v181_v14, 0 }
  0x31   : > { %v183_v18 = vsel %vm182_vm0, %v181_v14, 0  ;;  %vm476_vm1 = vcmp.gt.s32.totalorder %v475_v17, 0  ;;  %vm467_vm0 = vcmp.lt.s32.totalorder %v1159_v3, 0 }
  0x32   : > { %v184_v19 = vshrl.u32 %v183_v18, 5  ;;  %v185_v20 = vand.u32 31, %v183_v18  ;;  %v477_v21 = vsel %vm476_vm1, %v475_v17, 0  ;;  %vm466_vm1 = vcmp.le.f32.partialorder %v465_v6, 0.7853982 }
  0x33   : > { %v479_v23 = vand.u32 31, %v477_v21  ;;  %v1174_v36 = vshrl.u32 %v477_v21, 5 }
  0x34   : > { %v186_v25 = vsub.s32 32, %v185_v20  ;;  %v188_v27 = vshll.u32 %v1055_v26, %v185_v20  ;;  %v191_v29 = vshll.u32 %v1056_v28, %v185_v20  ;;  %v194_v31 = vshll.u32 %v1057_v30, %v185_v20 }
  0x35   : > { %v197_v33 = vshll.u32 %v1058_v32, %v185_v20  ;;  %v200_v35 = vshll.u32 %v1059_v34, %v185_v20  ;;  %vm203_vm2 = vcmp.lt.s32.totalorder %v184_v19, 1  ;;  %vm204_vm3 = vcmp.lt.s32.totalorder %v184_v19, 2 }
  0x36   : > { %v187_v37 = vshrl.u32 %v1055_v26, %v186_v25  ;;  %v189_v38 = vshrl.u32 %v1056_v28, %v186_v25  ;;  %v192_v39 = vshrl.u32 %v1057_v30, %v186_v25  ;;  %v195_v40 = vshrl.u32 %v1058_v32, %v186_v25 }
  0x37   : > { %v198_v41 = vshrl.u32 %v1059_v34, %v186_v25  ;;  %v201_v43 = vshrl.u32 %v1060_v42, %v186_v25  ;;  %vm206_vm4 = vcmp.lt.s32.totalorder %v184_v19, 4  ;;  %v480_v47 = vsub.s32 32, %v479_v23 }
  0x38   : > { %v190_v44 = vor.u32 %v189_v38, %v188_v27  ;;  %v193_v45 = vor.u32 %v192_v39, %v191_v29  ;;  %v196_v46 = vor.u32 %v195_v40, %v194_v31  ;;  %vm205_vm5 = vcmp.lt.s32.totalorder %v184_v19, 3 }
  0x39   : > { %v199_v48 = vor.u32 %v198_v41, %v197_v33  ;;  %v202_v49 = vor.u32 %v201_v43, %v200_v35  ;;  %v482_v50 = vshll.u32 %v1055_v26, %v479_v23  ;;  %v485_v58 = vshll.u32 %v1056_v28, %v479_v23 }
  0x3a   : > { %v207_v51 = vsel %vm203_vm2, %v187_v37, %v190_v44  ;;  %v208_v52 = vsel %vm206_vm4, %v196_v46, 2102212464  ;;  %v211_v53 = vsel %vm203_vm2, %v190_v44, %v193_v45  ;;  %v215_v54 = vsel %vm203_vm2, %v193_v45, %v196_v46 }
  0x3b   : > { %v209_v55 = vsel %vm205_vm5, %v193_v45, %v208_v52  ;;  %v212_v56 = vsel %vm206_vm4, %v199_v48, 920167782  ;;  %v216_v57 = vsel %vm206_vm4, %v202_v49, 1326507024  ;;  %v481_v61 = vshrl.u32 %v1055_v26, %v480_v47 }
  0x3c   : > { %v213_v59 = vsel %vm205_vm5, %v196_v46, %v212_v56  ;;  %v217_v60 = vsel %vm205_vm5, %v199_v48, %v216_v57  ;;  %v483_v62 = vshrl.u32 %v1056_v28, %v480_v47  ;;  %v210_v63 = vsel %vm204_vm3, %v207_v51, %v209_v55 }
  0x3d   : > { %v214_v0 = vsel %vm204_vm3, %v211_v53, %v213_v59  ;;  %v218_v1 = vsel %vm204_vm3, %v215_v54, %v217_v60  ;;  %v486_v5 = vshrl.u32 %v1057_v30, %v480_v47  ;;  %v488_v13 = vshll.u32 %v1057_v30, %v479_v23 }
  0x3e   : > { %v1183_v7 = vmul.u32.u64.low %v1170_v22, %v218_v1  ;;  %v1184_v8 = vmul.u32.u64.high %v1170_v22, %v218_v1, %v1183_v7  ;;  %v1187_v9 = vmul.u32.u64.low %v1170_v22, %v214_v0  ;;  %v1188_v10 = vmul.u32.u64.high %v1170_v22, %v214_v0, %v1187_v9 }
  0x3f   : > { %v484_v11 = vor.u32 %v483_v62, %v482_v50  ;;  %v487_v12 = vor.u32 %v486_v5, %v485_v58  ;;  %v489_v14 = vshrl.u32 %v1058_v32, %v480_v47  ;;  %v491_v15 = vshll.u32 %v1058_v32, %v479_v23 }
  0x40   : > { %v492_v16 = vshrl.u32 %v1059_v34, %v480_v47  ;;  %v494_v17 = vshll.u32 %v1059_v34, %v479_v23  ;;  %v495_v18 = vshrl.u32 %v1060_v42, %v480_v47  ;;  %v226_v19 = vmul.u32 %v1170_v22, %v210_v63 }
  0x41   : > { %v490_v20 = vor.u32 %v489_v14, %v488_v13  ;;  %vm497_vm6 = vcmp.lt.s32.totalorder %v1174_v36, 1  ;;  %vm498_vm7 = vcmp.lt.s32.totalorder %v1174_v36, 2  ;;  %vm228_vm8 = vc.u32 %v1184_v8, %v1187_v9 }
  0x42   : > { %v229_v21 = vadd.s32 1, %v1188_v10  ;;  %v493_v25 = vor.u32 %v492_v16, %v491_v15  ;;  %vm499_vm9 = vcmp.lt.s32.totalorder %v1174_v36, 3  ;;  %v496_v26 = vor.u32 %v495_v18, %v494_v17 }
  0x43   : > { %vm500_vm10 = vcmp.lt.s32.totalorder %v1174_v36, 4  ;;  %v501_v27 = vsel %vm497_vm6, %v481_v61, %v484_v11  ;;  %v505_v23 = vsel %vm497_vm6, %v484_v11, %v487_v12  ;;  %v509_v30 = vsel %vm497_vm6, %v487_v12, %v490_v20 }
  0x44   : > { %v230_v28 = vsel %vm228_vm8, %v229_v21, %v1188_v10  ;;  %v502_v22 = vsel %vm500_vm10, %v490_v20, 2102212464  ;;  %v506_v29 = vsel %vm500_vm10, %v493_v25, 920167782  ;;  %v510_v34 = vsel %vm500_vm10, %v496_v26, 1326507024 }
  0x45   : > { %v231_v31 = vadd.s32 %v230_v28, %v226_v19  ;;  %v503_v32 = vsel %vm499_vm9, %v487_v12, %v502_v22  ;;  %v507_v33 = vsel %vm499_vm9, %v490_v20, %v506_v29  ;;  %v511_v38 = vsel %vm499_vm9, %v493_v25, %v510_v34 }
  0x46   : > { %v504_v35 = vsel %vm498_vm7, %v501_v27, %v503_v32  ;;  %v508_v37 = vsel %vm498_vm7, %v505_v23, %v507_v33  ;;  %v512_v40 = vsel %vm498_vm7, %v509_v30, %v511_v38  ;;  %v227_v59 = vadd.s32 %v1187_v9, %v1184_v8 }
  0x47   : > { %v232_v39 = vadd.s32 536870912, %v231_v31  ;;  %v1205_v41 = vmul.u32.u64.low %v1172_v24, %v508_v37  ;;  %v1206_v42 = vmul.u32.u64.high %v1172_v24, %v508_v37, %v1205_v41  ;;  %v520_v46 = vmul.u32 %v1172_v24, %v504_v35 }
  0x48   : > { %v1209_v43 = vmul.u32.u64.low %v1172_v24, %v512_v40  ;;  %v1210_v44 = vmul.u32.u64.high %v1172_v24, %v512_v40, %v1209_v43  ;;  %v1061_v40 = vmov 1966171168   ;;  %vm263_vm8 = vweird.f32 %v1157_v2 }
  0x49   : > { %v233_v45 = vshrl.u32 %v232_v39, 30  ;;  %v523_v48 = vadd.s32 1, %v1206_v42 }
  0x4a   : > { %vm522_vm11 = vc.u32 %v1210_v44, %v1205_v41  ;;  %v521_v15 = vadd.s32 %v1205_v41, %v1210_v44  ;;  %v380_v41 = vunpack.c.l.s4 %v1061_v40 }
  0x4b   : > { %v234_v47 = vshll.u32 %v233_v45, 30  ;;  %v524_v36 = vsel %vm522_vm11, %v523_v48, %v1206_v42  ;;  %v257_v20 = vsub.s32 4, %v233_v45  ;;  %v382_v42 = vlaneseq }
  0x4c   : > { %v525_v50 = vadd.s32 %v524_v36, %v520_v46 }
  0x4d   : > { %v235_v49 = vsub.s32 %v231_v31, %v234_v47  ;;  %v258_v22 = vsel %vm173_vm14, %v257_v20, %v233_v45  ;;  %v381_v47 = vunpack.c.0.s8 %v380_v41  ;;  %v383_v48 = vshrl.u32 %v382_v42, 7 }
  0x4e   : > { %v526_v52 = vadd.s32 536870912, %v525_v50  ;;  %v260_v33 = vsel %vm172_vm15, 0, %v258_v22  ;;  %vm1227_vm9 = vcmp.lt.s32.totalorder %v382_v42, 256 }
  0x4f   : > { %v237_v51 = vsub.s32 0, %v235_v49  ;;  %v264_v37 = vadd.s32 3, %v260_v33  ;;  %v368_v45 = vand.u32 3, %v260_v33 }
  0x50   : > { %v527_v54 = vshrl.u32 %v526_v52, 30 }
  0x51   : > { %v860_v53 = vmin.u32 %v237_v51, %v235_v49  ;;  %v265_v44 = vand.u32 3, %v264_v37  ;;  %vm373_vm3 = vcmp.eq.s32.totalorder %v368_v45, 2  ;;  %vm370_vm5 = vcmp.eq.s32.totalorder %v368_v45, 0 }
  0x52   : > { %v528_v56 = vshll.u32 %v527_v54, 30  ;;  %v551_v35 = vsub.s32 4, %v527_v54  ;;  %vm369_vm7 = vcmp.lt.s32.totalorder %v368_v45, 2 }
  0x53   : > { %v239_v55 = vclz %v860_v53  ;;  %vm270_vm2 = vcmp.eq.s32.totalorder %v265_v44, 2  ;;  %vm267_vm4 = vcmp.eq.s32.totalorder %v265_v44, 0  ;;  %vm266_vm6 = vcmp.lt.s32.totalorder %v265_v44, 2 }
  0x54   : > { %v529_v58 = vsub.s32 %v525_v50, %v528_v56  ;;  %v552_v39 = vsel %vm467_vm0, %v551_v35, %v527_v54  ;;  %v384_v53 = vsub.s32 %v381_v47, %v383_v48 }
  0x55   : > { %v861_v57 = vadd.s32 4294967294, %v239_v55  ;;  %v554_v46 = vsel %vm466_vm1, 0, %v552_v39 }
  0x56   : > { %v531_v60 = vsub.s32 0, %v529_v58  ;;  %v558_v36 = vadd.s32 3, %v554_v46 }
  0x57   : > { %vm862_vm12 = vcmp.lt.s32.totalorder %v861_v57, 0 }
  0x58   : > { %v242_v24 = vsel %vm862_vm12, 0, %v861_v57  ;;  %v876_v0 = vmin.u32 %v531_v60, %v529_v58  ;;  %v559_v57 = vand.u32 3, %v558_v36 }
  0x59   : > { %v243_v61 = vsub.s32 32, %v242_v24  ;;  %v244_v62 = vshll.u32 %v235_v49, %v242_v24  ;;  %v247_v63 = vsub.s32 4294967266, %v242_v24 }
  0x5a   : > { %v533_v7 = vclz %v876_v0  ;;  %vm564_vm10 = vcmp.eq.s32.totalorder %v559_v57, 2  ;;  %vm561_vm12 = vcmp.eq.s32.totalorder %v559_v57, 0 }
  0x5b   : > { %v245_v1 = vshrl.u32 %v227_v59, %v243_v61  ;;  %v248_v5 = vadd.s32 127, %v247_v63 }
  0x5c   : > { %v877_v12 = vadd.s32 4294967294, %v533_v7 }
  0x5d   : > { %v246_v10 = vor.u32 %v245_v1, %v244_v62  ;;  %v249_v11 = vshll.u32 %v248_v5, 23 }
  0x5e   : > { %vm878_vm13 = vcmp.lt.s32.totalorder %v877_v12, 0 }
  0x5f   : > { %v250_v13 = vor.u32 4788187, %v249_v11  ;;  %v253_v14 = vcvt.s32.f32 %v246_v10  ;;  %v536_v8 = vsel %vm878_vm13, 0, %v877_v12 }
  0x60   : > { %v537_v9 = vsub.s32 32, %v536_v8  ;;  %v538_v17 = vshll.u32 %v529_v58, %v536_v8  ;;  %v541_v18 = vsub.s32 4294967266, %v536_v8  ;;  %v662_v58 = vand.u32 3, %v554_v46 }
  0x61   : > { %v251_v16 = vand.u32 2147483647, %v250_v13 }
  0x62   : > { %v539_v21 = vshrl.u32 %v521_v15, %v537_v9  ;;  %v542_v25 = vadd.s32 127, %v541_v18  ;;  %vm667_vm11 = vcmp.eq.s32.totalorder %v662_v58, 2  ;;  %vm663_vm13 = vcmp.lt.s32.totalorder %v662_v58, 2 }
  0x63   : > { %v254_v19 = vmul.f32 %v253_v14, %v251_v16 }
  0x64   : > { %v540_v27 = vor.u32 %v539_v21, %v538_v17  ;;  %v543_v23 = vshll.u32 %v542_v25, 23 }
  0x65   : > { %v255_v26 = vxor.u32 2147483648, %v254_v19 }
  0x66   : > { %v544_v30 = vor.u32 4788187, %v543_v23  ;;  %v547_v31 = vcvt.s32.f32 %v540_v27 }
  0x67   : > { %v256_v28 = vsel %vm173_vm14, %v255_v26, %v254_v19  ;;  %vm664_vm14 = vcmp.eq.s32.totalorder %v662_v58, 0 }
  0x68   : > { %v259_v29 = vsel %vm172_vm15, %v1157_v2, %v256_v28  ;;  %v545_v32 = vand.u32 2147483647, %v544_v30  ;;  %vm560_vm15 = vcmp.lt.s32.totalorder %v559_v57, 2 }
  0x69   : > { %966 = vcosq.f32 %v259_v29 }
  0x6a   : > { %968 = vsinq.f32 %v259_v29  ;;  %v548_v34 = vmul.f32 %v547_v31, %v545_v32 }
  0x6c   : > { %v549_v4 = vxor.u32 2147483648, %v548_v34 }
  0x6e   : > { %v550_v38 = vsel %vm467_vm0, %v549_v4, %v548_v34  ;;  %vm557_vm0 = vweird.f32 %v1159_v3 }
  0x6f   : > { %v553_v43 = vsel %vm466_vm1, %v1159_v3, %v550_v38 }
  0x70   : > { %970 = vcosq.f32 %v553_v43 }
  0x71   : > { %972 = vsinq.f32 %v553_v43 }
  0x76   : > { %v967_v49 = vpop.eup %966 }
  0x77   : > { %v969_v6 = vpop.eup %968  ;;  %v271_v50 = vxor.u32 2147483648, %v967_v49 }
  0x78   : > { %v268_v51 = vxor.u32 2147483648, %v969_v6 }
  0x79   : > { %v272_v52 = vsel %vm270_vm2, %v271_v50, %v969_v6  ;;  %v375_v54 = vsel %vm373_vm3, %v271_v50, %v969_v6 }
  0x7a   : > { %v269_v55 = vsel %vm267_vm4, %v967_v49, %v268_v51  ;;  %v372_v56 = vsel %vm370_vm5, %v967_v49, %v268_v51 }
  0x7b   : > { %v273_v59 = vsel %vm266_vm6, %v269_v55, %v272_v52  ;;  %v376_v24 = vsel %vm369_vm7, %v372_v56, %v375_v54 }
  0x7c   : > { %v274_v60 = vsel %vm263_vm8, nan, %v273_v59  ;;  %v377_v61 = vsel %vm263_vm8, nan, %v376_v24 }
  0x7d   : > { %v385_v62 = vrot.slane %v274_v60, %v384_v53  ;;  %v408_v63 = vrot.slane %v377_v61, %v384_v53  ;;  %v971_v2 = vpop.eup %970 }
  0x7e   : > { %v973_v11 = vpop.eup %972  ;;  %v565_v12 = vxor.u32 2147483648, %v971_v2 }
  0x7f   : > { %v392_v1 = vrot.slane %v385_v62, %v384_v53  ;;  %v415_v5 = vrot.slane %v408_v63, %v384_v53  ;;  %v420_v7 = vcombine.high %v385_v62, %v385_v62  ;;  %v432_v10 = vcombine.high %v408_v63, %v408_v63 }
  0x80   : > { %v562_v8 = vxor.u32 2147483648, %v973_v11  ;;  %v566_v9 = vsel %vm564_vm10, %v565_v12, %v973_v11  ;;  %v669_v17 = vsel %vm667_vm11, %v565_v12, %v973_v11 }
  0x81   : > { %867 = vst.msk [vmem:[%s1154_s19 + $0x4] ss:$8 sm:$0x3] %vm1227_vm9, %v392_v1  ;;  %868 = vst.msk [vmem:[%s1154_s19 + $0x14] ss:$8 sm:$0x3] %vm1227_vm9, %v415_v5  ;;  %v427_v13 = vrot.slane %v420_v7, %v384_v53  ;;  %v439_v14 = vrot.slane %v432_v10, %v384_v53  ;;  %v444_v15 = vcombine.high %v392_v1, %v392_v1 }
  0x82   : > { %v449_v16 = vcombine.high %v415_v5, %v415_v5  ;;  %v563_v20 = vsel %vm561_vm12, %v971_v2, %v562_v8  ;;  %v666_v21 = vsel %vm664_vm14, %v971_v2, %v562_v8 }
  0x83   : > { %869 = vst.msk [vmem:[%s1154_s19 + $0x6] ss:$8 sm:$0x3] %vm1227_vm9, %v427_v13  ;;  %870 = vst.msk [vmem:[%s1154_s19 + $0x16] ss:$8 sm:$0x3] %vm1227_vm9, %v439_v14  ;;  %v454_v18 = vcombine.high %v427_v13, %v427_v13  ;;  %v459_v19 = vcombine.high %v439_v14, %v439_v14  ;;  %v567_v25 = vsel %vm560_vm15, %v563_v20, %v566_v9 }
  0x84   : > { %871 = vst.msk [vmem:[%s1154_s19 + $0x10] ss:$8 sm:$0x3] %vm1227_vm9, %v444_v15  ;;  %872 = vst.msk [vmem:[%s1154_s19 + $0x20] ss:$8 sm:$0x3] %vm1227_vm9, %v449_v16  ;;  %v670_v26 = vsel %vm663_vm13, %v666_v21, %v669_v17 }
  0x85   : > { %873 = vst.msk [vmem:[%s1154_s19 + $0x12] ss:$8 sm:$0x3] %vm1227_vm9, %v454_v18  ;;  %874 = vst.msk [vmem:[%s1154_s19 + $0x22] ss:$8 sm:$0x3] %vm1227_vm9, %v459_v19 }
  0x86   : > { %v568_v27 = vsel %vm557_vm0, nan, %v567_v25  ;;  %v671_v23 = vsel %vm557_vm0, nan, %v670_v26 }
  0x87   : > { %v679_v3 = vrot.slane %v568_v27, %v384_v53  ;;  %v698_v28 = vrot.slane %v671_v23, %v384_v53 }
  0x89   : > { %v686_v22 = vrot.slane %v679_v3, %v384_v53  ;;  %v705_v29 = vrot.slane %v698_v28, %v384_v53  ;;  %v710_v30 = vcombine.high %v679_v3, %v679_v3  ;;  %v722_v31 = vcombine.high %v698_v28, %v698_v28 }
  0x8b   : > { %883 = vst.msk [vmem:[%s1154_s19 + $0x5] ss:$8 sm:$0x3] %vm1227_vm9, %v686_v22  ;;  %884 = vst.msk [vmem:[%s1154_s19 + $0x15] ss:$8 sm:$0x3] %vm1227_vm9, %v705_v29  ;;  %v717_v32 = vrot.slane %v710_v30, %v384_v53  ;;  %v729_v33 = vrot.slane %v722_v31, %v384_v53  ;;  %v734_v34 = vcombine.high %v686_v22, %v686_v22 }
  0x8c   : > { %v739_v35 = vcombine.high %v705_v29, %v705_v29 }
  0x8d   : > { %885 = vst.msk [vmem:[%s1154_s19 + $0x7] ss:$8 sm:$0x3] %vm1227_vm9, %v717_v32  ;;  %886 = vst.msk [vmem:[%s1154_s19 + $0x17] ss:$8 sm:$0x3] %vm1227_vm9, %v729_v33  ;;  %v744_v37 = vcombine.high %v717_v32, %v717_v32  ;;  %v749_v4 = vcombine.high %v729_v33, %v729_v33 }
  0x8e   : > { %887 = vst.msk [vmem:[%s1154_s19 + $0x11] ss:$8 sm:$0x3] %vm1227_vm9, %v734_v34  ;;  %888 = vst.msk [vmem:[%s1154_s19 + $0x21] ss:$8 sm:$0x3] %vm1227_vm9, %v739_v35 }
  0x8f   : > { %889 = vst.msk [vmem:[%s1154_s19 + $0x13] ss:$8 sm:$0x3] %vm1227_vm9, %v744_v37  ;;  %890 = vst.msk [vmem:[%s1154_s19 + $0x23] ss:$8 sm:$0x3] %vm1227_vm9, %v749_v4 }
  0x90 PF: > { %s14_s11 = sadd.s32 1, %s1052_s11   ;;  %s1310_s6 = smov %s1036_s7 }
  0x91   : > { %p11_p7 = scmp.ge.s32.totalorder %s14_s11, 4   ;;  %s1311_s7 = smov %s1040_s8 }
  0x92   : > { %s1312_s8 = smov %s1121_s18  ;;  %s1313_s9 = smov %s1048_s10 }
  0x93   : > { %s1314_s10 = smov %s1316_s13  ;;  %13 = sbr.rel (!%p11_p7) target bundleno = 4 (0x4), region = 80 }
  0x98   :  { %784 = vsyncpa [#allocation3], 1 }
  0x99   :  { %786 = vsyncpa [#allocation3 + $0x1], 1 }

</bundles_post_ra>
